<compile_context>
chip_gen: v7x
topology: tpu7x:2x2x1
jax: 0.10.0
libtpu: 0.0.40
codegen_flags: <defaults>
</compile_context>

<pallas_src>
import functools

import jax
import jax.numpy as jnp
from jax.experimental import pallas as pl
from jax.experimental.pallas import tpu as pltpu


def _round_up(x, m):
    return (x + m - 1) // m * m


def multiview_c_kernel(x_ref, w_ref, bias_ref, o_ref):
    """One N-tile of Linear(cat(ctx, jrnl_emb)).

    x_ref    : [B_pad, K_pad]   bf16/f32  activations (ctx ++ gathered emb), resident
    w_ref    : [K_pad, tn]      bf16/f32  weight tile, streamed (double-buffered)
    bias_ref : [1, tn]          f32       bias tile
    o_ref    : [B_pad, tn]      f32       output tile (lane-dense, unmasked stores)
    """
    acc = jnp.dot(x_ref[...], w_ref[...], preferred_element_type=jnp.float32)
    o_ref[...] = acc + bias_ref[...]


def prepare_multiview_c_params(emb_table, weight, bias, ctx_dim, *,
                               param_dtype=jnp.bfloat16, tn_target=512):
    """One-time parameter preparation (hoisted out of the per-call hot path).

    emb_table : [n_jrnl, jrnl_dim]                      f32
    weight    : [mesh_size, ctx_dim + jrnl_dim]         f32 (PyTorch nn.Linear layout)
    bias      : [mesh_size]                             f32
    Returns (emb_table_c, w_pad, bias_pad, static) where static = (mesh_size, tn, dtype).
    """
    jrnl_dim = emb_table.shape[1]
    mesh_size = weight.shape[0]
    k = ctx_dim + jrnl_dim
    assert weight.shape[1] == k

    # Sublane-friendly K, lane-dense N tile, N padded to a whole number of tiles.
    k_pad = _round_up(k, 16)
    tn = min(tn_target, _round_up(mesh_size, 128))
    n_pad = _round_up(mesh_size, tn)

    w_t = jnp.asarray(weight, jnp.float32).T                       # [K, N]
    w_pad = jnp.zeros((k_pad, n_pad), dtype=param_dtype)
    w_pad = w_pad.at[:k, :mesh_size].set(w_t.astype(param_dtype))

    bias_pad = jnp.zeros((1, n_pad), dtype=jnp.float32)
    bias_pad = bias_pad.at[0, :mesh_size].set(jnp.asarray(bias, jnp.float32))

    emb_table_c = jnp.asarray(emb_table).astype(param_dtype)
    return emb_table_c, w_pad, bias_pad, (mesh_size, tn, param_dtype)


def multiview_c_forward(jrnl_variable, context_vectors, emb_table, w_pad, bias_pad,
                        *, mesh_size, tn, param_dtype):
    """Forward pass. Static kwargs come from prepare_multiview_c_params."""
    B, ctx_dim = context_vectors.shape
    jrnl_dim = emb_table.shape[1]
    k = ctx_dim + jrnl_dim
    k_pad, n_pad = w_pad.shape
    b_rows = max(8, _round_up(B, 8))          # sublane-dense f32 output rows

    # Embedding gather (tiny): [B, jrnl_dim].
    idx = jrnl_variable.reshape(B).astype(jnp.int32)
    jrnl_emb = jnp.take(emb_table, idx, axis=0)

    # Virtual concat realized on the small activation tensor, padded to (b_rows, k_pad).
    x = jnp.concatenate(
        [context_vectors.astype(param_dtype), jrnl_emb.astype(param_dtype)], axis=1)
    x = jnp.pad(x, ((0, b_rows - B), (0, k_pad - k)))

    grid = (n_pad // tn,)
    out = pl.pallas_call(
        multiview_c_kernel,
        out_shape=jax.ShapeDtypeStruct((b_rows, n_pad), jnp.float32),
        grid=grid,
        in_specs=[
            pl.BlockSpec((b_rows, k_pad), lambda j: (0, 0)),   # activations, resident
            pl.BlockSpec((k_pad, tn), lambda j: (0, j)),       # weight tile, streamed
            pl.BlockSpec((1, tn), lambda j: (0, j)),           # bias tile
        ],
        out_specs=pl.BlockSpec((b_rows, tn), lambda j: (0, j)),
        compiler_params=pltpu.CompilerParams(
            dimension_semantics=("parallel",)),
    )(x, w_pad, bias_pad)

    return out[:B, :mesh_size]


if __name__ == "__main__":
    # Small, module-consistent sizes.
    B = 2
    n_jrnl = 10
    jrnl_dim = 8
    hidden_size = 16
    n_probes = 4
    mesh_size = 32
    ctx_dim = hidden_size * n_probes              # 64
    in_features = ctx_dim + jrnl_dim              # 72

    key = jax.random.PRNGKey(0)
    k_emb, k_w, k_b, k_ctx, k_idx = jax.random.split(key, 5)

    # Deterministic synthetic parameters (PyTorch layouts).
    emb_table = jax.random.normal(k_emb, (n_jrnl, jrnl_dim), dtype=jnp.float32)
    weight = jax.random.normal(k_w, (mesh_size, in_features), dtype=jnp.float32) * 0.1
    bias = jax.random.normal(k_b, (mesh_size,), dtype=jnp.float32) * 0.1

    # Inputs: jrnl_variable [B, 1] int, context_vectors [B, hidden*probes] float.
    jrnl_variable = jax.random.randint(k_idx, (B, 1), 0, n_jrnl, dtype=jnp.int32)
    context_vectors = jax.random.normal(k_ctx, (B, ctx_dim), dtype=jnp.float32)

    # Pure-JAX reference (mirrors the PyTorch forward exactly, f32 everywhere).
    jrnl_embedded = jnp.take(emb_table, jrnl_variable[:, 0], axis=0)   # [B, jrnl_dim]
    combined = jnp.concatenate([context_vectors, jrnl_embedded], axis=1)
    ref = combined @ weight.T + bias

    # --- f32 path: exact check of the kernel plumbing. ---
    emb_c, w_p, b_p, (ms, tn, dt) = prepare_multiview_c_params(
        emb_table, weight, bias, ctx_dim, param_dtype=jnp.float32)
    fwd_f32 = jax.jit(functools.partial(
        multiview_c_forward, mesh_size=ms, tn=tn, param_dtype=dt))
    out_f32 = jax.block_until_ready(fwd_f32(jrnl_variable, context_vectors,
                                            emb_c, w_p, b_p))
    assert out_f32.shape == (B, mesh_size)
    assert jnp.allclose(out_f32, ref, atol=1e-4, rtol=1e-4), "f32 mismatch vs reference"

    # --- bf16 weight-streaming path: the production configuration. ---
    emb_c, w_p, b_p, (ms, tn, dt) = prepare_multiview_c_params(
        emb_table, weight, bias, ctx_dim, param_dtype=jnp.bfloat16)
    fwd_bf16 = jax.jit(functools.partial(
        multiview_c_forward, mesh_size=ms, tn=tn, param_dtype=dt))
    out_bf16 = jax.block_until_ready(fwd_bf16(jrnl_variable, context_vectors,
                                              emb_c, w_p, b_p))
    assert out_bf16.shape == (B, mesh_size)
    assert jnp.allclose(out_bf16, ref, atol=5e-2, rtol=5e-2), "bf16 mismatch vs reference"

    print("KERNEL_OK")
</pallas_src>

<mosaic_0001>
module attributes {stable_mosaic.version = 11 : i64} {
  func.func @multiview_c_kernel(%arg0: i32, %arg1: memref<8x80xf32, #tpu.memory_space<vmem>>, %arg2: memref<80x128xf32, #tpu.memory_space<vmem>>, %arg3: memref<1x128xf32, #tpu.memory_space<vmem>>, %arg4: memref<8x128xf32, #tpu.memory_space<vmem>>) attributes {dimension_semantics = [#tpu.dimension_semantics<parallel>], iteration_bounds = array<i64: 1>, scalar_prefetch = 0 : i64, scratch_operands = 0 : i64, tpu.core_type = #tpu.core_type<tc>, window_params = [{pipeline_mode = #tpu.pipeline_mode<synchronous>, transform_indices = @transform_0, window_bounds = array<i64: 8, 80>}, {transform_indices = @transform_1, window_bounds = array<i64: 80, 128>}, {transform_indices = @transform_2, window_bounds = array<i64: 1, 128>}, {transform_indices = @transform_3, window_bounds = array<i64: 8, 128>}]} {
    %c0 = arith.constant 0 : index
    %c0_0 = arith.constant 0 : index
    %0 = vector.load %arg1[%c0, %c0_0] : memref<8x80xf32, #tpu.memory_space<vmem>>, vector<8x80xf32>
    %c0_1 = arith.constant 0 : index
    %c0_2 = arith.constant 0 : index
    %1 = vector.load %arg2[%c0_1, %c0_2] : memref<80x128xf32, #tpu.memory_space<vmem>>, vector<80x128xf32>
    %cst = arith.constant dense<0.000000e+00> : vector<8x128xf32>
    %2 = tpu.matmul %0, %1, %cst {dimension_numbers = #tpu.dot_dimension_numbers<[1], [0], [0], [1], [0, 0, 1, 1], [], []>} : vector<8x80xf32>, vector<80x128xf32>, vector<8x128xf32> -> vector<8x128xf32>
    %c0_3 = arith.constant 0 : index
    %c0_4 = arith.constant 0 : index
    %3 = vector.load %arg3[%c0_3, %c0_4] : memref<1x128xf32, #tpu.memory_space<vmem>>, vector<1x128xf32>
    %4 = vector.broadcast %3 : vector<1x128xf32> to vector<8x128xf32>
    %5 = arith.addf %2, %4 : vector<8x128xf32>
    %c0_5 = arith.constant 0 : index
    %c0_6 = arith.constant 0 : index
    %6 = vector.load %arg4[%c0_5, %c0_6] : memref<8x128xf32, #tpu.memory_space<vmem>>, vector<8x128xf32>
    tpu.vector_store %arg4[%c0_5, %c0_6], %5 {strides = array<i32>} : memref<8x128xf32, #tpu.memory_space<vmem>>, vector<8x128xf32>,
    return
  }
  func.func @transform_0(%arg0: i32) -> (i32, i32) {
    %c0_i32 = arith.constant 0 : i32
    %c0_i32_0 = arith.constant 0 : i32
    %c0_i32_1 = arith.constant 0 : i32
    return %c0_i32, %c0_i32_0 : i32, i32
  }
  func.func @transform_1(%arg0: i32) -> (i32, i32) {
    %c0_i32 = arith.constant 0 : i32
    %c0_i32_0 = arith.constant 0 : i32
    return %c0_i32, %arg0 : i32, i32
  }
  func.func @transform_2(%arg0: i32) -> (i32, i32) {
    %c0_i32 = arith.constant 0 : i32
    %c0_i32_0 = arith.constant 0 : i32
    return %c0_i32, %arg0 : i32, i32
  }
  func.func @transform_3(%arg0: i32) -> (i32, i32) {
    %c0_i32 = arith.constant 0 : i32
    %c0_i32_0 = arith.constant 0 : i32
    return %c0_i32, %arg0 : i32, i32
  }
}

</mosaic_0001>

<bundles_post_ra>
// kernel: multiview_c_forward.1
= control target key start
LH: loop header
LB: loop body
LE: loop exit
PB: predicated region body
PF: predicated region fallthrough
CT: control target
= control target key end

     0   :  { %8 = vsyncpa [#allocation3], 0  ;;  %s207_s12 = smov [#allocation2]   ;;  %s254_s0 = inlined_call_operand.vmem [shape: f32[8,80], index: 0, kind: input, shape index: {}]   ;;  %s255_s1 = inlined_call_operand.hbm [shape: f32[80,128], index: 1, kind: input, shape index: {}]   ;;  %s256_s2 = inlined_call_operand.vmem [shape: f32[1,128], index: 2, kind: input, shape index: {}]   ;;  %s257_s3 = inlined_call_operand.vmem [shape: f32[8,128], index: 3, kind: output, shape index: {}]  }
   0x1   :  { %s16_s13 = sshll.u32 %s207_s12, 4  ;;  %s183_s16 = scalar_lea.hbm %s255_s1, 1280  ;;  %s17_s13 = int_to_ptr.vmem [resolvable:$true] %s16_s13 }
   0x2   :  { %p184_p0 = scmp.ne.s32.totalorder %s255_s1, %s183_s16  ;;  %p187_p1 = scmp.lt.u32.totalorder %s183_s16, %s255_s1 }
   0x4   :  { %p189_p2 = pnand %p187_p1, %p184_p0 }
   0x6   :  { %192 = shalt.err (!%p189_p2)
}
   0x7   :  { %s193_s21 = scalar_lea.vmem %s17_s13, 1280  ;;  %p198_p4 = scmp.lt.s32.totalorder %s17_s13, %s17_s13 }
   0x8   :  { %p194_p3 = scmp.ne.s32.totalorder %s17_s13, %s193_s21  ;;  %p199_p5 = scmp.lt.s32.totalorder %s193_s21, %s193_s21 }
   0xa   :  { %p200_p6 = por %p199_p5, %p198_p4 }
   0xc   :  { %p201_p7 = pnand %p200_p6, %p194_p3 }
   0xe   :  { %204 = shalt.err (!%p201_p7)
}
   0xf   :  { %s208_s22 = smov 128   ;;  %s209_s23 = smov 8  }
  0x10   :  { %22 = dma.hbm_to_vmem [thread:$0]  %s255_s1, 1280, %s17_s13, [#allocation3], %s208_s22, %s208_s22, %s209_s23  }
  0x11   :  { %205 = dma.done.wait [#allocation3], 1280  }
  0x12   :  { %206 = vsyncadd [#allocation3], 4294966016  ;;  %v210_v0 = vmov 0.0|0.0   ;;  %vm211_vm0 = vmmov 0   ;;  %v212_v1 = vmov 0.0   ;;  %v29_v2 = vld [vmem:[#allocation2] sm:$0xff] }
  0x13   :  { %162 = vmatprep.subr.bf16.mxu0 %v210_v0  ;;  %159 = vmatprep.mubr.msk.f32.mxu0 %vm211_vm0, %v212_v1  ;;  %v30_v3 = vld [vmem:[#allocation2 + $0x8] sm:$0xff]  ;;  %v31_v4 = vld [vmem:[#allocation2 + $0x10] sm:$0xff]  ;;  %v32_v6 = vld [vmem:[#allocation2 + $0x18] sm:$0xff]  ;;  %vm46_vm1 = vcmask 654336  }
  0x14   :  { %v163_v5 = vpack.c.bf16 %v30_v3, %v29_v2  ;;  %v166_v7 = vpack.c.bf16 %v32_v6, %v31_v4  ;;  %v33_v8 = vld [vmem:[#allocation2 + $0x20] sm:$0xff]  ;;  %v34_v9 = vld [vmem:[#allocation2 + $0x28] sm:$0xff]  ;;  %v35_v11 = vld [vmem:[#allocation2 + $0x30] sm:$0xff] }
  0x15   :  { %v169_v10 = vpack.c.bf16 %v34_v9, %v33_v8  ;;  %v36_v12 = vld [vmem:[#allocation2 + $0x38] sm:$0xff]  ;;  %v37_v14 = vld [vmem:[#allocation2 + $0x40] sm:$0xff]  ;;  %v38_v15 = vld [vmem:[#allocation2 + $0x48] sm:$0xff] }
  0x16   :  { %164 = vmatpush3.bf16.msra.mxu0 %v163_v5  ;;  %v172_v13 = vpack.c.bf16 %v36_v12, %v35_v11  ;;  %v175_v16 = vpack.c.bf16 %v38_v15, %v37_v14  ;;  %v28_v17 = vld [vmem:[%s254_s0] sm:$0xff] }
  0x17   :  { %165 = vmatprep.subr.bf16.mxu0 %v210_v0  ;;  %v126_v18 = vld [vmem:[%s256_s2] ss:$0 sm:$0xff] }
  0x1a   :  { %167 = vmatpush3.bf16.msra.mxu0 %v166_v7 }
  0x1b   :  { %168 = vmatprep.subr.bf16.mxu0 %v210_v0 }
  0x1e   :  { %170 = vmatpush3.bf16.msra.mxu0 %v169_v10 }
  0x1f   :  { %171 = vmatprep.subr.bf16.mxu0 %v210_v0 }
  0x22   :  { %173 = vmatpush3.bf16.msra.mxu0 %v172_v13 }
  0x23   :  { %174 = vmatprep.subr.bf16.mxu0 %v210_v0 }
  0x26   :  { %176 = vmatpush3.bf16.msra.mxu0 %v175_v16 }
  0x29   :  { %160 = vmatmul.mubr.msk.f32.vlgmr.msra.gmra.mrb[0].mxu0 %vm46_vm1, %v28_v17 }
  0xfc   :  { %v116_v19 = vpop.f32.mrb[0].mxu0 }
  0xfd   :  { %v117_v20 = vadd.f32 %v126_v18, %v116_v19  ;;  %v161_v21 = vpop.f32.mrb[1].mxu0 }
  0xff   :  { %120 = vst [vmem:[%s257_s3] sm:$0xff] %v117_v20 }
 0x100   :  { %125 = vsyncpa [#allocation3], 1 }

</bundles_post_ra>
